<compile_context>
chip_gen: v6e
topology: v6e:2x2x1
jax: 0.10.0
libtpu: 0.0.40
codegen_flags: <defaults>
</compile_context>

<pallas_src>
import jax
import jax.numpy as jnp
from jax.experimental import pallas as pl
from jax.experimental.pallas import tpu as pltpu


def diagonal_scale_kernel(d_ref, x_ref, o_ref):
    # d_ref: (1, nodes) broadcast row of precomputed diagonal scales
    # x_ref, o_ref: (tb, nodes) tiles of the input / output stream
    o_ref[...] = (x_ref[...] * d_ref[...]).astype(o_ref.dtype)


def _compute_d(a, M, dtype):
    # Tiny (nodes,)-sized op; negligible vs the batch*nodes stream.
    Ms = M[0]
    f = Ms * jax.nn.sigmoid(a / Ms) + Ms
    d = f / jnp.roll(f, -1)
    return d.reshape(1, -1).astype(dtype)


def diagonal_forward(inp, a, M, *, tb=None, vmem_limit_bytes=32 * 1024 * 1024):
    """Pallas equivalent of Diagonal.forward.

    inp: (batch, nodes) float32
    a:   (nodes,)       float32 parameter
    M:   (1,)           float32 buffer (must be > 0, same as PyTorch ref)
    """
    batch, nodes = inp.shape
    d = _compute_d(a, M, inp.dtype)

    # --- pick the largest batch tile that fits the VMEM budget -------------
    if tb is None:
        bytes_per_row = nodes * jnp.dtype(inp.dtype).itemsize
        # 2 pipeline buffers x (input tile + output tile) ~= 4 * tile bytes;
        # leave headroom by only budgeting 1/4 of the scoped VMEM limit.
        budget = vmem_limit_bytes // 4
        tb = min(batch, max(8, budget // (4 * bytes_per_row)))
        tb = (tb // 8) * 8            # sublane-aligned
        tb = max(8, min(tb, 2048))    # cap to stay comfortably below OOM

    # --- ragged batch: cdiv grid + wrapper-side padding ---------------------
    num_tiles = pl.cdiv(batch, tb)
    padded = num_tiles * tb
    x = inp if padded == batch else jnp.pad(inp, ((0, padded - batch), (0, 0)))

    out = pl.pallas_call(
        diagonal_scale_kernel,
        out_shape=jax.ShapeDtypeStruct((padded, nodes), inp.dtype),
        grid_spec=pltpu.PrefetchScalarGridSpec(
            num_scalar_prefetch=0,
            grid=(num_tiles,),
            in_specs=[
                pl.BlockSpec((1, nodes), lambda i: (0, 0)),    # d (broadcast)
                pl.BlockSpec((tb, nodes), lambda i: (i, 0)),   # inp tile
            ],
            out_specs=pl.BlockSpec((tb, nodes), lambda i: (i, 0)),
        ),
        compiler_params=pltpu.CompilerParams(
            dimension_semantics=("parallel",),
            vmem_limit_bytes=vmem_limit_bytes,
        ),
    )(d, x)

    if padded != batch:
        out = out[:batch]
    return out


def diagonal_reference(inp, a, M):
    Ms = M[0]
    f = Ms * jax.nn.sigmoid(a / Ms) + Ms
    d = f / jnp.roll(f, -1)
    return d * inp


if __name__ == "__main__":
    key = jax.random.PRNGKey(0)
    k_a, k_x = jax.random.split(key)

    nodes = 128
    batch = 16
    M_val = 1.0

    # Parameter init mirrors torch: a = M * randn(nodes); M buffer = [M].
    a = M_val * jax.random.normal(k_a, (nodes,), dtype=jnp.float32)
    M = jnp.array([M_val], dtype=jnp.float32)
    x = jax.random.normal(k_x, (batch, nodes), dtype=jnp.float32)

    out = diagonal_forward(x, a, M)
    out = jax.block_until_ready(out)

    ref = diagonal_reference(x, a, M)
    assert out.shape == (batch, nodes)
    assert jnp.allclose(out, ref, atol=1e-5, rtol=1e-5), "mismatch vs reference"

    # also exercise the ragged-batch path (batch not divisible by the tile)
    x_odd = jax.random.normal(k_x, (batch + 3, nodes), dtype=jnp.float32)
    out_odd = jax.block_until_ready(diagonal_forward(x_odd, a, M, tb=8))
    assert jnp.allclose(out_odd, diagonal_reference(x_odd, a, M),
                        atol=1e-5, rtol=1e-5), "ragged-batch mismatch"

    print("KERNEL_OK")
</pallas_src>

<mosaic_0001>
module attributes {stable_mosaic.version = 11 : i64} {
  func.func @diagonal_scale_kernel(%arg0: i32, %arg1: memref<1x128xf32, #tpu.memory_space<vmem>>, %arg2: memref<16x128xf32, #tpu.memory_space<vmem>>, %arg3: memref<16x128xf32, #tpu.memory_space<vmem>>) attributes {dimension_semantics = [#tpu.dimension_semantics<parallel>], iteration_bounds = array<i64: 1>, scalar_prefetch = 0 : i64, scratch_operands = 0 : i64, tpu.core_type = #tpu.core_type<tc>, window_params = [{pipeline_mode = #tpu.pipeline_mode<synchronous>, transform_indices = @transform_0, window_bounds = array<i64: 1, 128>}, {transform_indices = @transform_1, window_bounds = array<i64: 16, 128>}, {transform_indices = @transform_2, window_bounds = array<i64: 16, 128>}]} {
    %c0 = arith.constant 0 : index
    %c0_0 = arith.constant 0 : index
    %0 = vector.load %arg2[%c0, %c0_0] : memref<16x128xf32, #tpu.memory_space<vmem>>, vector<16x128xf32>
    %c0_1 = arith.constant 0 : index
    %c0_2 = arith.constant 0 : index
    %1 = vector.load %arg1[%c0_1, %c0_2] : memref<1x128xf32, #tpu.memory_space<vmem>>, vector<1x128xf32>
    %2 = vector.broadcast %1 : vector<1x128xf32> to vector<16x128xf32>
    %3 = arith.mulf %0, %2 : vector<16x128xf32>
    %c0_3 = arith.constant 0 : index
    %c0_4 = arith.constant 0 : index
    %4 = vector.load %arg3[%c0_3, %c0_4] : memref<16x128xf32, #tpu.memory_space<vmem>>, vector<16x128xf32>
    tpu.vector_store %arg3[%c0_3, %c0_4], %3 {strides = array<i32>} : memref<16x128xf32, #tpu.memory_space<vmem>>, vector<16x128xf32>,
    return
  }
  func.func @transform_0(%arg0: i32) -> (i32, i32) {
    %c0_i32 = arith.constant 0 : i32
    %c0_i32_0 = arith.constant 0 : i32
    %c0_i32_1 = arith.constant 0 : i32
    return %c0_i32, %c0_i32_0 : i32, i32
  }
  func.func @transform_1(%arg0: i32) -> (i32, i32) {
    %c0_i32 = arith.constant 0 : i32
    %c0_i32_0 = arith.constant 0 : i32
    return %arg0, %c0_i32 : i32, i32
  }
  func.func @transform_2(%arg0: i32) -> (i32, i32) {
    %c0_i32 = arith.constant 0 : i32
    %c0_i32_0 = arith.constant 0 : i32
    return %arg0, %c0_i32 : i32, i32
  }
}

</mosaic_0001>

<bundles_post_ra>
// kernel: tpu_custom_call.1
= control target key start
LH: loop header
LB: loop body
LE: loop exit
PB: predicated region body
PF: predicated region fallthrough
CT: control target
= control target key end

     0   :  { %7 = vsyncpa [#allocation3], 0  ;;  %s170_s0 = inlined_call_operand.hbm [shape: f32[1,128], index: 0, kind: input, shape index: {}]   ;;  %s171_s1 = inlined_call_operand.hbm [shape: f32[16,128], index: 1, kind: input, shape index: {}]   ;;  %s172_s2 = inlined_call_operand.hbm [shape: f32[16,128], index: 2, kind: output, shape index: {}]  }
   0x1   :  { %8 = vsyncpa [#allocation6], 0 }
   0x2   :  { %9 = vsyncpa [#allocation4], 0  ;;  %s141_s9 = smov [#allocation2]   ;;  %s142_s11 = smov [#allocation5]  }
   0x3   :  { %s16_s10 = sshll.u32 %s141_s9, 4  ;;  %s25_s12 = sshll.u32 %s142_s11, 4  ;;  %s17_s10 = int_to_ptr.vmem [resolvable:$true] %s16_s10  ;;  %s26_s12 = int_to_ptr.vmem [resolvable:$true] %s25_s12 }
   0x4   :  { %s83_s13 = scalar_lea.vmem %s17_s10, 16  ;;  %s87_s14 = scalar_lea.vmem %s17_s10, 32 }
   0x5   :  { %p84_p0 = scmp.ne.s32.totalorder %s17_s10, %s83_s13  ;;  %p88_p1 = scmp.lt.s32.totalorder %s17_s10, %s17_s10 }
   0x6   :  { %p89_p2 = scmp.lt.s32.totalorder %s87_s14, %s83_s13 }
   0x8   :  { %p90_p3 = por %p89_p2, %p88_p1 }
   0xa   :  { %p91_p4 = pnand %p90_p3, %p84_p0 }
   0xc   :  { %94 = shalt.err (!%p91_p4)
}
   0xd   :  { %19 = dma.hbm_to_vmem [thread:$0]  %s170_s0, 16, %s17_s10, [#allocation3]  }
   0xe   :  { %s103_s17 = scalar_lea.vmem %s26_s12, 256  ;;  %p108_p6 = scmp.lt.s32.totalorder %s26_s12, %s26_s12 }
   0xf   :  { %p104_p5 = scmp.ne.s32.totalorder %s26_s12, %s103_s17  ;;  %p109_p7 = scmp.lt.s32.totalorder %s103_s17, %s103_s17 }
  0x11   :  { %p110_p8 = por %p109_p7, %p108_p6 }
  0x13   :  { %p111_p9 = pnand %p110_p8, %p104_p5 }
  0x15   :  { %114 = shalt.err (!%p111_p9)
}
  0x16   :  { %s143_s18 = smov 128   ;;  %s144_s19 = smov 8  }
  0x17   :  { %31 = dma.hbm_to_vmem [thread:$0]  %s171_s1, 256, %s26_s12, [#allocation6], %s143_s18, %s143_s18, %s144_s19  }
  0x18   :  { %135 = dma.done.wait [#allocation3], 16  }
  0x19   :  { %136 = vsyncadd [#allocation3], 4294967280 }
  0x1a   :  { %137 = dma.done.wait [#allocation6], 256  }
  0x1b   :  { %138 = vsyncadd [#allocation6], 4294967040  ;;  %s145_s22 = smov [#allocation7]   ;;  %v38_v0 = vld [vmem:[#allocation5] sm:$0xff]  ;;  %v69_v1 = vld [vmem:[#allocation2] ss:$0 sm:$0xff] }
  0x1c   :  { %s56_s23 = sshll.u32 %s145_s22, 4  ;;  %v39_v2 = vld [vmem:[#allocation5 + $0x8] sm:$0xff]  ;;  %v47_v3 = vmul.f32 %v69_v1, %v38_v0  ;;  %s57_s23 = int_to_ptr.vmem [resolvable:$true] %s56_s23 }
  0x1d   :  { %v48_v4 = vmul.f32 %v69_v1, %v39_v2  ;;  %s115_s0 = scalar_lea.vmem %s57_s23, 256  ;;  %p120_p11 = scmp.lt.s32.totalorder %s57_s23, %s57_s23 }
  0x1e   :  { %49 = vst [vmem:[#allocation7] sm:$0xff] %v47_v3  ;;  %p116_p10 = scmp.ne.s32.totalorder %s57_s23, %s115_s0  ;;  %p121_p12 = scmp.lt.s32.totalorder %s115_s0, %s115_s0 }
  0x1f   :  { %50 = vst [vmem:[#allocation7 + $0x8] sm:$0xff] %v48_v4 }
  0x20   :  { %p122_p13 = por %p121_p12, %p120_p11 }
  0x22   :  { %p123_p0 = pnand %p122_p13, %p116_p10 }
  0x24   :  { %126 = shalt.err (!%p123_p0)
}
  0x25   :  { %62 = dma.vmem_to_hbm [thread:$0]  %s57_s23, 256, %s172_s2, [#allocation4], %s143_s18, %s143_s18, %s144_s19  }
  0x26   :  { %139 = dma.done.wait [#allocation4], 256  }
  0x27   :  { %140 = vsyncadd [#allocation4], 4294967040 }
  0x28   :  { %66 = vsyncpa [#allocation3], 1 }
  0x29   :  { %67 = vsyncpa [#allocation6], 1 }
  0x2a   :  { %68 = vsyncpa [#allocation4], 1 }

</bundles_post_ra>
